<compile_context>
chip_gen: v5e
topology: v5e:2x2
jax: 0.10.0
libtpu: 0.0.40
codegen_flags: <defaults>
</compile_context>

<pallas_src>
import functools

import jax
import jax.numpy as jnp
from jax.experimental import pallas as pl
from jax.experimental.pallas import tpu as pltpu


# --- tuning constants -------------------------------------------------------
_SMALL_FAST_PATH_BYTES = 8 << 20   # below this, plain XLA slices fuse into consumers
_MAX_DMA_CHUNKS = 4                # per-segment DMA parallelism along the batch axis


def _vmem_budget_and_limit():
    """Generation-aware (resident VMEM budget, scoped VMEM limit) in bytes."""
    try:
        cap = pltpu.get_tpu_info().vmem_capacity_bytes
    except Exception:  # no TPU info available: be conservative (v7x per-TC VMEM)
        cap = 64 << 20
    if cap <= (64 << 20):            # v7x: 64 MiB per TensorCore -> keep 32/48 MiB
        return 32 << 20, 48 << 20
    return cap // 2, (cap * 3) // 4  # v5e / v6e: 128 MiB -> 64 / 96 MiB


def _chunks(n, max_chunks):
    """Split range(n) into up to max_chunks contiguous (start, length) pieces."""
    k = max(1, min(max_chunks, n))
    base, rem = divmod(n, k)
    out, start = [], 0
    for i in range(k):
        ln = base + (1 if i < rem else 0)
        if ln:
            out.append((start, ln))
        start += ln
    return out


def _split_hbm_dma_kernel(x_ref, *refs, offsets, sizes, b_chunks):
    """Lane-aligned path: one strided HBM->HBM DMA per (segment, batch-chunk).

    No VMEM staging: every byte moves HBM->HBM exactly once; multiple DMAs are
    kept in flight (one per segment x batch-chunk) to keep HBM streaming.
    """
    n = len(sizes)
    out_refs, sem = refs[:n], refs[n]
    copies = []
    for i, (o_ref, start, size) in enumerate(zip(out_refs, offsets, sizes)):
        for j, (b0, bl) in enumerate(b_chunks):
            cp = pltpu.make_async_copy(
                x_ref.at[b0:b0 + bl, :, start:start + size],
                o_ref.at[b0:b0 + bl, :, :],
                sem.at[i, j],
            )
            cp.start()
            copies.append(cp)
    for cp in copies:
        cp.wait()


def _split_vreg_kernel(x_ref, *out_refs, offsets, sizes):
    """Fallback (lane-misaligned, force_pallas only): per-segment Ref slice
    load -> store, keeping vreg pressure to one segment at a time."""
    for o_ref, start, size in zip(out_refs, offsets, sizes):
        o_ref[...] = x_ref[:, start:start + size]


def _choose_row_tile(n_rows, emb_dim, itemsize, budget, row_tile=None):
    # Sublane granularity: 8 rows for 32-bit, 16 for bf16, 32 for int8.
    sub = max(8, 32 // max(itemsize, 1))
    if row_tile is None:
        # Resident VMEM ~= 2*(TM*E) input buffers + 2*(TM*sum(d)) output buffers.
        tm = budget // max(4 * emb_dim * itemsize, 1)
    else:
        tm = int(row_tile)
    tm = min(tm, n_rows)
    if tm >= n_rows:
        return n_rows                       # full row extent is always a legal block
    return max((tm // sub) * sub, sub)


def ec2_splitter(emb_in, splitted_dim_list, *, row_tile=None, force_pallas=False):
    """Pallas implementation of EC2Splitter.forward.

    Args:
      emb_in: (B, S, emb_dim) array.
      splitted_dim_list: ints summing to emb_dim.
      row_tile: optional override for rows-per-block in the vreg fallback path.
      force_pallas: skip the XLA fast paths (used for testing).

    Returns:
      List of arrays; the i-th has shape (B, S, splitted_dim_list[i]).
    """
    B, S, E = emb_in.shape
    sizes = tuple(int(d) for d in splitted_dim_list)
    if sum(sizes) != E:
        raise ValueError("Component dims not compatible with embedding as a whole!")
    offsets, start = [], 0
    for d in sizes:
        offsets.append(start)
        start += d
    offsets = tuple(offsets)

    itemsize = jnp.dtype(emb_in.dtype).itemsize
    total_bytes = B * S * E * itemsize
    # offsets are cumulative sums of sizes, so sizes % 128 == 0 implies aligned offsets.
    lane_aligned = all(d % 128 == 0 for d in sizes)

    budget, vmem_limit = _vmem_budget_and_limit()

    def _xla_slices():
        return [emb_in[:, :, o:o + d] for o, d in zip(offsets, sizes)]

    if not force_pallas:
        # Tiny inputs: a parameter-free slice is best left to XLA (fuses into
        # consumers; a 1-2 step Pallas grid is pure launch overhead).
        # Lane-misaligned splits: sub-128 outputs lower to masked stores and
        # rarely beat plain XLA slices, so route them to XLA as well.
        if total_bytes <= _SMALL_FAST_PATH_BYTES or not lane_aligned:
            return _xla_slices()

    cost = pl.CostEstimate(flops=0, transcendentals=0, bytes_accessed=2 * total_bytes)

    if lane_aligned:
        b_chunks = _chunks(B, _MAX_DMA_CHUNKS)
        kernel = functools.partial(
            _split_hbm_dma_kernel, offsets=offsets, sizes=sizes, b_chunks=b_chunks)
        outs = pl.pallas_call(
            kernel,
            out_shape=tuple(
                jax.ShapeDtypeStruct((B, S, d), emb_in.dtype) for d in sizes),
            in_specs=[pl.BlockSpec(memory_space=pl.ANY)],
            out_specs=tuple(pl.BlockSpec(memory_space=pl.ANY) for _ in sizes),
            scratch_shapes=[pltpu.SemaphoreType.DMA((len(sizes), len(b_chunks)))],
            compiler_params=pltpu.CompilerParams(vmem_limit_bytes=vmem_limit),
            cost_estimate=cost,
        )(emb_in)
        return list(outs)

    # Lane-misaligned + force_pallas: tiled vreg copy over flattened rows.
    # TODO(synk): a lane-dense concatenated output + outside-kernel slicing would
    # avoid masked sub-128 stores; kept per-segment outputs to match the module.
    R = B * S
    sub = max(8, 32 // max(itemsize, 1))
    if 4 * sub * E * itemsize > budget:
        # Even the minimal (sub, E) tile would blow the VMEM budget: fall back.
        return _xla_slices()

    x2 = emb_in.reshape(R, E)
    tm = _choose_row_tile(R, E, itemsize, budget, row_tile)
    num_blocks = pl.cdiv(R, tm)   # ragged last block handled by Pallas block masking
    kernel = functools.partial(_split_vreg_kernel, offsets=offsets, sizes=sizes)
    outs = pl.pallas_call(
        kernel,
        out_shape=tuple(jax.ShapeDtypeStruct((R, d), emb_in.dtype) for d in sizes),
        grid=(num_blocks,),
        in_specs=[pl.BlockSpec((tm, E), lambda r: (r, 0))],
        out_specs=tuple(pl.BlockSpec((tm, d), lambda r: (r, 0)) for d in sizes),
        compiler_params=pltpu.CompilerParams(
            # Single "parallel" row axis: megacore-shardable whenever >= 2 steps.
            dimension_semantics=("parallel",),
            vmem_limit_bytes=vmem_limit,
        ),
        cost_estimate=cost,
    )(x2)
    return [o.reshape(B, S, d) for o, d in zip(outs, sizes)]


def _check(outs, emb_in, splits):
    B, S, _ = emb_in.shape
    start = 0
    for out, d in zip(outs, splits):
        ref = emb_in[:, :, start:start + d]
        assert out.shape == (B, S, d), (out.shape, (B, S, d))
        assert jnp.array_equal(out, ref), "segment mismatch"
        start += d


if __name__ == "__main__":
    key = jax.random.PRNGKey(0)

    # Case A: module-spec small shape, default dispatch (XLA fast path).
    B, S, E = 2, 8, 32
    splits_a = [8, 16, 8]
    x_a = jax.random.normal(key, (B, S, E), dtype=jnp.float32)
    outs = jax.block_until_ready(ec2_splitter(x_a, splits_a))
    _check(outs, x_a, splits_a)

    # Case B: same shape, forced through the Pallas vreg-fallback kernel.
    outs = jax.block_until_ready(ec2_splitter(x_a, splits_a, force_pallas=True))
    _check(outs, x_a, splits_a)

    # Case C: 128-lane-aligned splits -> pure HBM->HBM DMA kernel.
    B, S, E = 2, 64, 256
    splits_c = [128, 128]
    x_c = jax.random.normal(jax.random.fold_in(key, 1), (B, S, E), dtype=jnp.float32)
    outs = jax.block_until_ready(ec2_splitter(x_c, splits_c, force_pallas=True))
    _check(outs, x_c, splits_c)

    # Case D: misaligned splits + non-dividing row tile (ragged last block,
    # no host-side padding anymore).
    B, S, E = 2, 64, 96
    splits_d = [32, 40, 24]
    x_d = jax.random.normal(jax.random.fold_in(key, 2), (B, S, E), dtype=jnp.float32)
    outs = jax.block_until_ready(
        ec2_splitter(x_d, splits_d, force_pallas=True, row_tile=40))
    _check(outs, x_d, splits_d)

    # Case E: bf16 misaligned splits through the vreg path (sublane-packed dtype).
    B, S, E = 2, 16, 64
    splits_e = [24, 40]
    x_e = jax.random.normal(jax.random.fold_in(key, 3), (B, S, E)).astype(jnp.bfloat16)
    outs = jax.block_until_ready(ec2_splitter(x_e, splits_e, force_pallas=True))
    _check(outs, x_e, splits_e)

    print("KERNEL_OK")
</pallas_src>

<mosaic_0001>
module attributes {stable_mosaic.version = 11 : i64} {
  func.func @_split_vreg_kernel(%arg0: i32, %arg1: memref<16x32xf32, #tpu.memory_space<vmem>>, %arg2: memref<16x8xf32, #tpu.memory_space<vmem>>, %arg3: memref<16x16xf32, #tpu.memory_space<vmem>>, %arg4: memref<16x8xf32, #tpu.memory_space<vmem>>) attributes {dimension_semantics = [#tpu.dimension_semantics<parallel>], iteration_bounds = array<i64: 1>, scalar_prefetch = 0 : i64, scratch_operands = 0 : i64, tpu.core_type = #tpu.core_type<tc>, window_params = [{transform_indices = @transform_0, window_bounds = array<i64: 16, 32>}, {transform_indices = @transform_1, window_bounds = array<i64: 16, 8>}, {transform_indices = @transform_2, window_bounds = array<i64: 16, 16>}, {transform_indices = @transform_3, window_bounds = array<i64: 16, 8>}]} {
    %c0 = arith.constant 0 : index
    %c0_0 = arith.constant 0 : index
    %0 = vector.load %arg1[%c0, %c0_0] : memref<16x32xf32, #tpu.memory_space<vmem>>, vector<16x8xf32>
    %c0_1 = arith.constant 0 : index
    %c0_2 = arith.constant 0 : index
    %1 = vector.load %arg2[%c0_1, %c0_2] : memref<16x8xf32, #tpu.memory_space<vmem>>, vector<16x8xf32>
    tpu.vector_store %arg2[%c0_1, %c0_2], %0 {strides = array<i32>} : memref<16x8xf32, #tpu.memory_space<vmem>>, vector<16x8xf32>,
    %c0_3 = arith.constant 0 : index
    %c8 = arith.constant 8 : index
    %2 = vector.load %arg1[%c0_3, %c8] : memref<16x32xf32, #tpu.memory_space<vmem>>, vector<16x16xf32>
    %c0_4 = arith.constant 0 : index
    %c0_5 = arith.constant 0 : index
    %3 = vector.load %arg3[%c0_4, %c0_5] : memref<16x16xf32, #tpu.memory_space<vmem>>, vector<16x16xf32>
    tpu.vector_store %arg3[%c0_4, %c0_5], %2 {strides = array<i32>} : memref<16x16xf32, #tpu.memory_space<vmem>>, vector<16x16xf32>,
    %c0_6 = arith.constant 0 : index
    %c24 = arith.constant 24 : index
    %4 = vector.load %arg1[%c0_6, %c24] : memref<16x32xf32, #tpu.memory_space<vmem>>, vector<16x8xf32>
    %c0_7 = arith.constant 0 : index
    %c0_8 = arith.constant 0 : index
    %5 = vector.load %arg4[%c0_7, %c0_8] : memref<16x8xf32, #tpu.memory_space<vmem>>, vector<16x8xf32>
    tpu.vector_store %arg4[%c0_7, %c0_8], %4 {strides = array<i32>} : memref<16x8xf32, #tpu.memory_space<vmem>>, vector<16x8xf32>,
    return
  }
  func.func @transform_0(%arg0: i32) -> (i32, i32) {
    %c0_i32 = arith.constant 0 : i32
    %c0_i32_0 = arith.constant 0 : i32
    return %arg0, %c0_i32 : i32, i32
  }
  func.func @transform_1(%arg0: i32) -> (i32, i32) {
    %c0_i32 = arith.constant 0 : i32
    %c0_i32_0 = arith.constant 0 : i32
    return %arg0, %c0_i32 : i32, i32
  }
  func.func @transform_2(%arg0: i32) -> (i32, i32) {
    %c0_i32 = arith.constant 0 : i32
    %c0_i32_0 = arith.constant 0 : i32
    return %arg0, %c0_i32 : i32, i32
  }
  func.func @transform_3(%arg0: i32) -> (i32, i32) {
    %c0_i32 = arith.constant 0 : i32
    %c0_i32_0 = arith.constant 0 : i32
    return %arg0, %c0_i32 : i32, i32
  }
}

</mosaic_0001>

<bundles_post_ra>
// kernel: tpu_custom_call.1
= control target key start
LH: loop header
LB: loop body
LE: loop exit
PB: predicated region body
PF: predicated region fallthrough
CT: control target
= control target key end

     0   :  { %9 = vsyncpa [#allocation3], 0  ;;  %s197_s0 = inlined_call_operand.hbm [shape: f32[16,32], index: 0, kind: input, shape index: {}]   ;;  %s198_s1 = inlined_call_operand.vmem [shape: f32[16,8], index: 1, kind: output, shape index: {0}]   ;;  %s199_s2 = inlined_call_operand.hbm [shape: f32[16,16], index: 2, kind: output, shape index: {1}]   ;;  %s200_s3 = inlined_call_operand.vmem [shape: f32[16,8], index: 3, kind: output, shape index: {2}]  }
   0x1   :  { %10 = vsyncpa [#allocation4], 0  ;;  %s15_s14 = sshll.u32 %s197_s0, 4  ;;  %s143_s15 = smov [#allocation2]   ;;  %s16_s14 = int_to_ptr.hbm [resolvable:$true] %s15_s14 }
   0x2   :  { %s17_s16 = sshll.u32 %s143_s15, 4  ;;  %s144_s17 = smov 128   ;;  %s18_s16 = int_to_ptr.vmem [resolvable:$true] %s17_s16 }
   0x3   :  { %s145_s18 = smov 8  }
   0x4   :  { %23 = dma.hbm_to_vmem [thread:$0]  %s16_s14, 256, %s18_s16, [#allocation3], %s144_s17, %s144_s17, %s145_s18  }
   0x5   :  { %139 = dma.done.wait [#allocation3], 256  }
   0x6   :  { %140 = vsyncadd [#allocation3], 4294967040  ;;  %v33_v0 = vld [vmem:[#allocation2] sm:$0xff]  ;;  %s146_s19 = smov 120   ;;  %s147_s20 = smov 104   ;;  %v34_v1 = vld [vmem:[#allocation2 + $0x8] sm:$0xff] }
   0x7   :  { %37 = vrot.lane.b32.xlu0 %v33_v0, %s146_s19  ;;  %50 = vrot.lane.b32.xlu1 %v33_v0, %s147_s20  ;;  %vm30_vm0 = vcmask 64512   ;;  %vm43_vm1 = vcmask 130048   ;;  %s148_s26 = smov [#allocation5]   ;;  %s66_s30 = sshll.u32 %s199_s2, 4  ;;  %s67_s30 = int_to_ptr.hbm [resolvable:$true] %s66_s30 }
   0x8   :  { %31 = vst.msk [vmem:[%s198_s1] sm:$0xff] %vm30_vm0, %v33_v0  ;;  %s64_s27 = sshll.u32 %s148_s26, 4  ;;  %s65_s27 = int_to_ptr.vmem [resolvable:$true] %s64_s27 }
   0x9   :  { %32 = vst.msk [vmem:[%s198_s1 + $0x8] sm:$0xff] %vm30_vm0, %v34_v1 }
   0xf   :  { %39 = vrot.lane.b32.xlu0 %v34_v1, %s146_s19  ;;  %52 = vrot.lane.b32.xlu1 %v34_v1, %s147_s20 }
  0x79   :  { %v38_v2 = vpop.permute.xlu0 %37  ;;  %v51_v3 = vpop.permute.xlu1 %50 }
  0x7a   :  { %44 = vst.msk [vmem:[#allocation5] sm:$0xff] %vm43_vm1, %v38_v2 }
  0x7b   :  { %56 = vst.msk [vmem:[%s200_s3] sm:$0xff] %vm30_vm0, %v51_v3 }
  0x81   :  { %v40_v4 = vpop.permute.xlu0 %39  ;;  %v53_v5 = vpop.permute.xlu1 %52 }
  0x82   :  { %45 = vst.msk [vmem:[#allocation5 + $0x8] sm:$0xff] %vm43_vm1, %v40_v4 }
  0x83   :  { %57 = vst.msk [vmem:[%s200_s3 + $0x8] sm:$0xff] %vm30_vm0, %v53_v5 }
  0x84   :  { %72 = dma.vmem_to_hbm [thread:$0]  %s65_s27, 256, %s67_s30, [#allocation4], %s144_s17, %s144_s17, %s145_s18  }
  0x85   :  { %141 = dma.done.wait [#allocation4], 256  }
  0x86   :  { %142 = vsyncadd [#allocation4], 4294967040 }
  0x87   :  { %83 = vsyncpa [#allocation3], 1 }
  0x88   :  { %84 = vsyncpa [#allocation4], 1 }

</bundles_post_ra>
